<compile_context>
chip_gen: v7x
topology: tpu7x:2x2x1
jax: 0.10.0
libtpu: 0.0.40
codegen_flags: <defaults>
</compile_context>

<pallas_src>
import jax
import jax.numpy as jnp
from jax.experimental import pallas as pl
from jax.experimental.pallas import tpu as pltpu

_HIDDEN = 128
_LANES = 128
_VEC_COLS = 8          # columns: [w1 | b1 | b2 | w3 | zero-pad]
_MAX_TILE_B = 8192     # VMEM ceiling for the (128, TB) f32 intermediates (v7x: 64 MiB VMEM)


def _mlp_kernel(x_ref, vec_ref, w2_ref, b3_ref, o_ref):
    # Batch-on-lanes layout: x/out are (1, TB); activations are (128, TB).
    x = x_ref[...]                                   # (1, TB)  f32
    vec = vec_ref[...]                               # (128, 8) f32
    w1 = vec[:, 0:1]                                 # (128, 1)
    b1 = vec[:, 1:2]
    b2 = vec[:, 2:3]
    w3 = vec[:, 3:4]

    # Layer 1: Linear(1,128) == rank-1 outer product -> pure VPU broadcast mul-add.
    h1 = jnp.maximum(w1 * x + b1, 0.0)               # (128, TB)

    # Layer 2: Linear(128,128) -> MXU; operand dtype follows w2_ref (bf16 by default),
    # accumulation is always f32.
    h2 = jnp.dot(w2_ref[...], h1.astype(w2_ref.dtype),
                 preferred_element_type=jnp.float32) + b2
    h2 = jnp.maximum(h2, 0.0)                        # (128, TB)

    # Layer 3: Linear(128,1) -> VPU multiply + XLU sublane reduce; (1, TB) lane-dense.
    y = jnp.sum(w3 * h2, axis=0, keepdims=True) + b3_ref[0]
    o_ref[...] = -jnp.abs(y)                         # (1, TB)


def _round_up(v: int, m: int) -> int:
    return ((v + m - 1) // m) * m


def _const_spec(shape, single_buffer):
    """BlockSpec for a grid-invariant operand; single-buffered when supported."""
    index_map = lambda i: (0,) * len(shape)
    if single_buffer and hasattr(pl, "Buffered"):
        try:
            return pl.BlockSpec(shape, index_map, pipeline_mode=pl.Buffered(1))
        except TypeError:       # older BlockSpec without pipeline_mode kwarg
            pass
    return pl.BlockSpec(shape, index_map)


def _build_call(TB, n_tiles, B_pad, w2_dtype, single_buffer):
    weight_bytes = (_HIDDEN * _VEC_COLS + 1) * 4 \
        + _HIDDEN * _HIDDEN * jnp.dtype(w2_dtype).itemsize
    cost = pl.CostEstimate(
        flops=2 * B_pad * _HIDDEN * _HIDDEN + 6 * B_pad * _HIDDEN,
        transcendentals=0,
        bytes_accessed=weight_bytes + 2 * 4 * B_pad,
    )
    return pl.pallas_call(
        _mlp_kernel,
        out_shape=jax.ShapeDtypeStruct((1, B_pad), jnp.float32),
        grid=(n_tiles,),
        in_specs=[
            pl.BlockSpec((1, TB), lambda i: (0, i)),            # x tile (lane-dense)
            _const_spec((_HIDDEN, _VEC_COLS), single_buffer),   # [w1|b1|b2|w3] coalesced
            _const_spec((_HIDDEN, _HIDDEN), single_buffer),     # w2^T (VMEM-resident)
            pl.BlockSpec((1,), lambda i: (0,),
                         memory_space=pltpu.MemorySpace.SMEM),  # b3 scalar in SMEM
        ],
        out_specs=pl.BlockSpec((1, TB), lambda i: (0, i)),      # lane-dense output
        compiler_params=pltpu.CompilerParams(
            dimension_semantics=("parallel",),                  # megacore sharding on v7x
            vmem_limit_bytes=32 * 1024 * 1024,
        ),
        cost_estimate=cost,
    )


def hedging_strategy_forward(x, params, *, tile_b=8192, use_bf16=True, min_tiles=2):
    """x: (B, 1) float32. Returns (B, 1) float32 == -abs(MLP(x)).

    use_bf16:  bf16 MXU operands for the 128x128 layer (f32 accumulation). Default True
               (fast path on all generations); set False for strict f32 parity.
    min_tiles: keep at least this many batch tiles when B is large enough so both v7x
               TensorCores get work; the extra grid step is ~0.35 us on single-TC chips.
    """
    B = int(x.shape[0])
    B128 = _round_up(max(B, 1), _LANES)

    TB = min(_round_up(tile_b, _LANES), B128, _MAX_TILE_B)
    if min_tiles > 1 and B128 >= min_tiles * _LANES:
        TB = min(TB, _round_up(-(-B128 // min_tiles), _LANES))
    B_pad = _round_up(B, TB)
    n_tiles = B_pad // TB

    # Re-layout: batch on lanes; coalesce the four (128,) vectors into one operand.
    x_t = jnp.pad(x.reshape(1, B).astype(jnp.float32), ((0, 0), (0, B_pad - B)))
    vec = jnp.stack(
        [params["w1"].reshape(_HIDDEN), params["b1"].reshape(_HIDDEN),
         params["b2"].reshape(_HIDDEN), params["w3"].reshape(_HIDDEN)], axis=1)
    vec = jnp.pad(vec.astype(jnp.float32), ((0, 0), (0, _VEC_COLS - 4)))
    w2_t = params["w2"].T.astype(jnp.bfloat16 if use_bf16 else jnp.float32)
    b3 = params["b3"].reshape(1).astype(jnp.float32)

    try:
        out_pad = _build_call(TB, n_tiles, B_pad, w2_t.dtype, True)(x_t, vec, w2_t, b3)
    except Exception:  # fallback if single-buffered pipeline_mode is unsupported
        out_pad = _build_call(TB, n_tiles, B_pad, w2_t.dtype, False)(x_t, vec, w2_t, b3)

    return out_pad[0, :B].reshape(B, 1)


def init_params(key):
    """Deterministic init mimicking PyTorch nn.Linear (U(-1/sqrt(fan_in), 1/sqrt(fan_in)))."""
    k1, k2, k3, k4, k5, k6 = jax.random.split(key, 6)

    def u(k, shape, fan_in):
        bound = 1.0 / (fan_in ** 0.5)
        return jax.random.uniform(k, shape, jnp.float32, -bound, bound)

    return {
        "w1": u(k1, (1, 128), 1),      # Linear(1, 128).weight^T
        "b1": u(k2, (1, 128), 1),      # Linear(1, 128).bias
        "w2": u(k3, (128, 128), 128),  # Linear(128, 128).weight^T
        "b2": u(k4, (1, 128), 128),    # Linear(128, 128).bias
        "w3": u(k5, (128, 1), 128),    # Linear(128, 1).weight^T
        "b3": u(k6, (1, 1), 128),      # Linear(128, 1).bias
        # `cost` parameter from the module is unused in forward; omitted from the kernel.
    }


def reference_forward(x, p):
    h1 = jnp.maximum(x @ p["w1"] + p["b1"], 0.0)
    h2 = jnp.maximum(h1 @ p["w2"] + p["b2"], 0.0)
    return -jnp.abs(h2 @ p["w3"] + p["b3"])


if __name__ == "__main__":
    key = jax.random.PRNGKey(0)
    pkey, xkey, xkey2 = jax.random.split(key, 3)
    params = init_params(pkey)

    # Small-batch test (single 128-lane tile, padded).
    B = 8
    x = jax.random.normal(xkey, (B, 1), dtype=jnp.float32)
    ref = reference_forward(x, params)

    # Strict f32-parity path.
    out_f32 = jax.block_until_ready(hedging_strategy_forward(x, params, use_bf16=False))
    assert out_f32.shape == (B, 1)
    assert jnp.allclose(out_f32, ref, atol=1e-4, rtol=1e-4)

    # Default fast path: bf16 MXU operands, f32 accumulation (small numeric drift expected).
    out = jax.block_until_ready(hedging_strategy_forward(x, params))
    assert out.shape == (B, 1)
    assert jnp.allclose(out, ref, atol=5e-2, rtol=5e-2)

    # Multi-tile test: exercises the batch grid (>=2 tiles), resident weights, and padding.
    B2 = 300
    x2 = jax.random.normal(xkey2, (B2, 1), dtype=jnp.float32)
    ref2 = reference_forward(x2, params)
    out2 = jax.block_until_ready(hedging_strategy_forward(x2, params, tile_b=128))
    assert out2.shape == (B2, 1)
    assert jnp.allclose(out2, ref2, atol=5e-2, rtol=5e-2)

    print("KERNEL_OK")
</pallas_src>

<mosaic_0001>
module attributes {stable_mosaic.version = 11 : i64} {
  func.func @_mlp_kernel(%arg0: i32, %arg1: memref<1x128xf32, #tpu.memory_space<vmem>>, %arg2: memref<128x8xf32, #tpu.memory_space<vmem>>, %arg3: memref<128x128xf32, #tpu.memory_space<vmem>>, %arg4: memref<1xf32, #tpu.memory_space<smem>>, %arg5: memref<1x128xf32, #tpu.memory_space<vmem>>) attributes {dimension_semantics = [#tpu.dimension_semantics<parallel>], iteration_bounds = array<i64: 1>, scalar_prefetch = 0 : i64, scratch_operands = 0 : i64, tpu.core_type = #tpu.core_type<tc>, window_params = [{transform_indices = @transform_0, window_bounds = array<i64: 1, 128>}, {pipeline_mode = #tpu.pipeline_mode<synchronous>, transform_indices = @transform_1, window_bounds = array<i64: 128, 8>}, {pipeline_mode = #tpu.pipeline_mode<synchronous>, transform_indices = @transform_2, window_bounds = array<i64: 128, 128>}, {transform_indices = @transform_3, window_bounds = array<i64: 1>}, {transform_indices = @transform_4, window_bounds = array<i64: 1, 128>}]} {
    %c0 = arith.constant 0 : index
    %c0_0 = arith.constant 0 : index
    %0 = vector.load %arg1[%c0, %c0_0] : memref<1x128xf32, #tpu.memory_space<vmem>>, vector<1x128xf32>
    %c0_1 = arith.constant 0 : index
    %c0_2 = arith.constant 0 : index
    %1 = vector.load %arg2[%c0_1, %c0_2] : memref<128x8xf32, #tpu.memory_space<vmem>>, vector<128x8xf32>
    %2 = vector.extract_strided_slice %1 {offsets = [0, 0], sizes = [128, 1], strides = [1, 1]} : vector<128x8xf32> to vector<128x1xf32>
    %3 = vector.extract_strided_slice %1 {offsets = [0, 1], sizes = [128, 1], strides = [1, 1]} : vector<128x8xf32> to vector<128x1xf32>
    %4 = vector.extract_strided_slice %1 {offsets = [0, 2], sizes = [128, 1], strides = [1, 1]} : vector<128x8xf32> to vector<128x1xf32>
    %5 = vector.extract_strided_slice %1 {offsets = [0, 3], sizes = [128, 1], strides = [1, 1]} : vector<128x8xf32> to vector<128x1xf32>
    %6 = vector.broadcast %2 : vector<128x1xf32> to vector<128x128xf32>
    %7 = vector.broadcast %0 : vector<1x128xf32> to vector<128x128xf32>
    %8 = arith.mulf %6, %7 : vector<128x128xf32>
    %9 = vector.broadcast %3 : vector<128x1xf32> to vector<128x128xf32>
    %10 = arith.addf %8, %9 : vector<128x128xf32>
    %cst = arith.constant 0.000000e+00 : f32
    %11 = vector.broadcast %cst : f32 to vector<128x128xf32>
    %12 = arith.maximumf %10, %11 : vector<128x128xf32>
    %c0_3 = arith.constant 0 : index
    %c0_4 = arith.constant 0 : index
    %13 = vector.load %arg3[%c0_3, %c0_4] : memref<128x128xf32, #tpu.memory_space<vmem>>, vector<128x128xf32>
    %cst_5 = arith.constant dense<0.000000e+00> : vector<128x128xf32>
    %14 = tpu.matmul %13, %12, %cst_5 {dimension_numbers = #tpu.dot_dimension_numbers<[1], [0], [0], [1], [0, 0, 1, 1], [], []>} : vector<128x128xf32>, vector<128x128xf32>, vector<128x128xf32> -> vector<128x128xf32>
    %15 = vector.broadcast %4 : vector<128x1xf32> to vector<128x128xf32>
    %16 = arith.addf %14, %15 : vector<128x128xf32>
    %cst_6 = arith.constant 0.000000e+00 : f32
    %17 = vector.broadcast %cst_6 : f32 to vector<128x128xf32>
    %18 = arith.maximumf %16, %17 : vector<128x128xf32>
    %19 = vector.broadcast %5 : vector<128x1xf32> to vector<128x128xf32>
    %20 = arith.mulf %19, %18 : vector<128x128xf32>
    %cst_7 = arith.constant dense<0.000000e+00> : vector<128xf32>
    %21 = vector.multi_reduction <add>, %20, %cst_7 [0] : vector<128x128xf32> to vector<128xf32>
    %22 = vector.shape_cast %21 : vector<128xf32> to vector<1x128xf32>
    %c0_8 = arith.constant 0 : index
    %23 = memref.load %arg4[%c0_8] : memref<1xf32, #tpu.memory_space<smem>>
    %24 = vector.broadcast %23 : f32 to vector<1x128xf32>
    %25 = arith.addf %22, %24 : vector<1x128xf32>
    %26 = math.absf %25 : vector<1x128xf32>
    %cst_9 = arith.constant 0.000000e+00 : f32
    %27 = vector.broadcast %cst_9 : f32 to vector<1x128xf32>
    %28 = arith.subf %27, %26 : vector<1x128xf32>
    %c0_10 = arith.constant 0 : index
    %c0_11 = arith.constant 0 : index
    %29 = vector.load %arg5[%c0_10, %c0_11] : memref<1x128xf32, #tpu.memory_space<vmem>>, vector<1x128xf32>
    tpu.vector_store %arg5[%c0_10, %c0_11], %28 {strides = array<i32>} : memref<1x128xf32, #tpu.memory_space<vmem>>, vector<1x128xf32>,
    return
  }
  func.func @transform_0(%arg0: i32) -> (i32, i32) {
    %c0_i32 = arith.constant 0 : i32
    %c0_i32_0 = arith.constant 0 : i32
    return %c0_i32, %arg0 : i32, i32
  }
  func.func @transform_1(%arg0: i32) -> (i32, i32) {
    %c0_i32 = arith.constant 0 : i32
    %c0_i32_0 = arith.constant 0 : i32
    %c0_i32_1 = arith.constant 0 : i32
    return %c0_i32, %c0_i32_0 : i32, i32
  }
  func.func @transform_2(%arg0: i32) -> (i32, i32) {
    %c0_i32 = arith.constant 0 : i32
    %c0_i32_0 = arith.constant 0 : i32
    %c0_i32_1 = arith.constant 0 : i32
    return %c0_i32, %c0_i32_0 : i32, i32
  }
  func.func @transform_3(%arg0: i32) -> i32 {
    %c0_i32 = arith.constant 0 : i32
    %c0_i32_0 = arith.constant 0 : i32
    return %c0_i32 : i32
  }
  func.func @transform_4(%arg0: i32) -> (i32, i32) {
    %c0_i32 = arith.constant 0 : i32
    %c0_i32_0 = arith.constant 0 : i32
    return %c0_i32, %arg0 : i32, i32
  }
}

module attributes {stable_mosaic.version = 11 : i64} {
  func.func @_mlp_kernel(%arg0: i32, %arg1: memref<1x128xf32, #tpu.memory_space<vmem>>, %arg2: memref<128x8xf32, #tpu.memory_space<vmem>>, %arg3: memref<128x128xf32, #tpu.memory_space<vmem>>, %arg4: memref<1xf32, #tpu.memory_space<smem>>, %arg5: memref<1x128xf32, #tpu.memory_space<vmem>>) attributes {dimension_semantics = [#tpu.dimension_semantics<parallel>], iteration_bounds = array<i64: 1>, scalar_prefetch = 0 : i64, scratch_operands = 0 : i64, tpu.core_type = #tpu.core_type<tc>, window_params = [{transform_indices = @transform_0, window_bounds = array<i64: 1, 128>}, {pipeline_mode = #tpu.pipeline_mode<synchronous>, transform_indices = @transform_1, window_bounds = array<i64: 128, 8>}, {pipeline_mode = #tpu.pipeline_mode<synchronous>, transform_indices = @transform_2, window_bounds = array<i64: 128, 128>}, {transform_indices = @transform_3, window_bounds = array<i64: 1>}, {transform_indices = @transform_4, window_bounds = array<i64: 1, 128>}]} {
    %c0 = arith.constant 0 : index
    %c0_0 = arith.constant 0 : index
    %0 = vector.load %arg1[%c0, %c0_0] : memref<1x128xf32, #tpu.memory_space<vmem>>, vector<1x128xf32>
    %c0_1 = arith.constant 0 : index
    %c0_2 = arith.constant 0 : index
    %1 = vector.load %arg2[%c0_1, %c0_2] : memref<128x8xf32, #tpu.memory_space<vmem>>, vector<128x8xf32>
    %2 = vector.extract_strided_slice %1 {offsets = [0, 0], sizes = [128, 1], strides = [1, 1]} : vector<128x8xf32> to vector<128x1xf32>
    %3 = vector.extract_strided_slice %1 {offsets = [0, 1], sizes = [128, 1], strides = [1, 1]} : vector<128x8xf32> to vector<128x1xf32>
    %4 = vector.extract_strided_slice %1 {offsets = [0, 2], sizes = [128, 1], strides = [1, 1]} : vector<128x8xf32> to vector<128x1xf32>
    %5 = vector.extract_strided_slice %1 {offsets = [0, 3], sizes = [128, 1], strides = [1, 1]} : vector<128x8xf32> to vector<128x1xf32>
    %6 = vector.broadcast %2 : vector<128x1xf32> to vector<128x128xf32>
    %7 = vector.broadcast %0 : vector<1x128xf32> to vector<128x128xf32>
    %8 = arith.mulf %6, %7 : vector<128x128xf32>
    %9 = vector.broadcast %3 : vector<128x1xf32> to vector<128x128xf32>
    %10 = arith.addf %8, %9 : vector<128x128xf32>
    %cst = arith.constant 0.000000e+00 : f32
    %11 = vector.broadcast %cst : f32 to vector<128x128xf32>
    %12 = arith.maximumf %10, %11 : vector<128x128xf32>
    %c0_3 = arith.constant 0 : index
    %c0_4 = arith.constant 0 : index
    %13 = vector.load %arg3[%c0_3, %c0_4] : memref<128x128xf32, #tpu.memory_space<vmem>>, vector<128x128xf32>
    %cst_5 = arith.constant dense<0.000000e+00> : vector<128x128xf32>
    %14 = tpu.matmul %13, %12, %cst_5 {dimension_numbers = #tpu.dot_dimension_numbers<[1], [0], [0], [1], [0, 0, 1, 1], [], []>} : vector<128x128xf32>, vector<128x128xf32>, vector<128x128xf32> -> vector<128x128xf32>
    %15 = vector.broadcast %4 : vector<128x1xf32> to vector<128x128xf32>
    %16 = arith.addf %14, %15 : vector<128x128xf32>
    %cst_6 = arith.constant 0.000000e+00 : f32
    %17 = vector.broadcast %cst_6 : f32 to vector<128x128xf32>
    %18 = arith.maximumf %16, %17 : vector<128x128xf32>
    %19 = vector.broadcast %5 : vector<128x1xf32> to vector<128x128xf32>
    %20 = arith.mulf %19, %18 : vector<128x128xf32>
    %cst_7 = arith.constant dense<0.000000e+00> : vector<128xf32>
    %21 = vector.multi_reduction <add>, %20, %cst_7 [0] : vector<128x128xf32> to vector<128xf32>
    %22 = vector.shape_cast %21 : vector<128xf32> to vector<1x128xf32>
    %c0_8 = arith.constant 0 : index
    %23 = memref.load %arg4[%c0_8] : memref<1xf32, #tpu.memory_space<smem>>
    %24 = vector.broadcast %23 : f32 to vector<1x128xf32>
    %25 = arith.addf %22, %24 : vector<1x128xf32>
    %26 = math.absf %25 : vector<1x128xf32>
    %cst_9 = arith.constant 0.000000e+00 : f32
    %27 = vector.broadcast %cst_9 : f32 to vector<1x128xf32>
    %28 = arith.subf %27, %26 : vector<1x128xf32>
    %c0_10 = arith.constant 0 : index
    %c0_11 = arith.constant 0 : index
    %29 = vector.load %arg5[%c0_10, %c0_11] : memref<1x128xf32, #tpu.memory_space<vmem>>, vector<1x128xf32>
    tpu.vector_store %arg5[%c0_10, %c0_11], %28 {strides = array<i32>} : memref<1x128xf32, #tpu.memory_space<vmem>>, vector<1x128xf32>,
    return
  }
  func.func @transform_0(%arg0: i32) -> (i32, i32) {
    %c0_i32 = arith.constant 0 : i32
    %c0_i32_0 = arith.constant 0 : i32
    return %c0_i32, %arg0 : i32, i32
  }
  func.func @transform_1(%arg0: i32) -> (i32, i32) {
    %c0_i32 = arith.constant 0 : i32
    %c0_i32_0 = arith.constant 0 : i32
    %c0_i32_1 = arith.constant 0 : i32
    return %c0_i32, %c0_i32_0 : i32, i32
  }
  func.func @transform_2(%arg0: i32) -> (i32, i32) {
    %c0_i32 = arith.constant 0 : i32
    %c0_i32_0 = arith.constant 0 : i32
    %c0_i32_1 = arith.constant 0 : i32
    return %c0_i32, %c0_i32_0 : i32, i32
  }
  func.func @transform_3(%arg0: i32) -> i32 {
    %c0_i32 = arith.constant 0 : i32
    %c0_i32_0 = arith.constant 0 : i32
    return %c0_i32 : i32
  }
  func.func @transform_4(%arg0: i32) -> (i32, i32) {
    %c0_i32 = arith.constant 0 : i32
    %c0_i32_0 = arith.constant 0 : i32
    return %c0_i32, %arg0 : i32, i32
  }
}

</mosaic_0001>

<bundles_post_ra>
// kernel: tpu_custom_call.1
= control target key start
LH: loop header
LB: loop body
LE: loop exit
PB: predicated region body
PF: predicated region fallthrough
CT: control target
= control target key end

     0   :  { %v786_v2 = vmov 1   ;;  %s1057_s0 = inlined_call_operand.vmem [shape: f32[1,128], index: 0, kind: input, shape index: {}]   ;;  %s1058_s1 = inlined_call_operand.vmem [shape: f32[128,8], index: 1, kind: input, shape index: {}]   ;;  %s1059_s2 = inlined_call_operand.vmem [shape: f32[128,128], index: 2, kind: input, shape index: {}]   ;;  %s1060_s3 = inlined_call_operand.<no memory space> [shape: f32[1], index: 3, kind: input, shape index: {}]   ;;  %s1061_s4 = inlined_call_operand.hbm [shape: f32[1,128], index: 4, kind: output, shape index: {}]  }
   0x1   :  { %v819_v0 = vld [vmem:[%s1058_s1 + $0x10] sm:$0xff]  ;;  %v824_v1 = vld [vmem:[%s1058_s1] sm:$0xff]  ;;  %740 = vset.pattern.permute.xlu0 %v786_v2  ;;  %738 = vset.pattern.permute.xlu1 %v786_v2  ;;  %v838_v4 = vld [vmem:[%s1058_s1 + $0x8] sm:$0xff] }
   0x2   :  { %147 = vperm.xlu0 %740, %v819_v0   ;;  %139 = vperm.xlu1 %738, %v824_v1   ;;  %v833_v3 = vld [vmem:[%s1058_s1 + $0x30] sm:$0xff] }
   0x3   :  { %10 = vsyncpa [#allocation4], 0  ;;  %v845_v5 = vld [vmem:[%s1058_s1 + $0x50] sm:$0xff]  ;;  %v850_v6 = vld [vmem:[%s1058_s1 + $0x18] sm:$0xff]  ;;  %v787_v7 = vmov 0   ;;  %v788_v20 = vmov 2  }
   0x4   :  { %v860_v8 = vld [vmem:[%s1058_s1 + $0x20] sm:$0xff]  ;;  %v868_v9 = vld [vmem:[%s1058_s1 + $0x28] sm:$0xff]  ;;  %v883_v11 = vld [vmem:[%s1058_s1 + $0x38] sm:$0xff]  ;;  %v789_v21 = vmov 3   ;;  %s790_s26 = smov [#allocation3]  }
   0x5   :  { %v878_v10 = vld [vmem:[%s1058_s1 + $0x48] sm:$0xff]  ;;  %v28_v13 = vld [vmem:[%s1058_s1 + $0x40] sm:$0xff]  ;;  %v902_v14 = vld [vmem:[%s1058_s1 + $0x70] sm:$0xff]  ;;  %s588_s27 = sshll.u32 %s790_s26, 4  ;;  %s589_s27 = int_to_ptr.vmem [resolvable:$true] %s588_s27 }
   0x6   :  { %163 = vperm.xlu0 %740, %v833_v3   ;;  %143 = vperm.xlu1 %738, %v838_v4   ;;  %v893_v12 = vld [vmem:[%s1058_s1 + $0x68] sm:$0xff]  ;;  %v912_v15 = vld [vmem:[%s1058_s1 + $0x58] sm:$0xff]  ;;  %v920_v16 = vld [vmem:[%s1058_s1 + $0x60] sm:$0xff]  ;;  %s762_s28 = scalar_lea.vmem %s589_s27, 16  ;;  %s766_s29 = scalar_lea.vmem %s589_s27, 32 }
   0x7   :  { %v929_v17 = vld [vmem:[%s1058_s1 + $0x78] sm:$0xff]  ;;  %v234_v18 = vld [vmem:[%s1059_s2] sm:$0xff]  ;;  %p763_p0 = scmp.ne.s32.totalorder %s589_s27, %s762_s28  ;;  %p767_p1 = scmp.lt.s32.totalorder %s589_s27, %s589_s27 }
   0x8   :  { %v242_v19 = vld [vmem:[%s1059_s2 + $0x40] sm:$0xff]  ;;  %661 = vmatprep.mubr.f32.mxu0 %v234_v18  ;;  %p768_p2 = scmp.lt.s32.totalorder %s766_s29, %s762_s28 }
   0x9   :  { %673 = vmatprep.mubr.f32.mxu1 %v242_v19  ;;  %v965_v28 = vld [vmem:[%s1057_s0] ss:$0 sm:$0xff] }
   0xa   :  { %179 = vperm.xlu0 %740, %v845_v5   ;;  %739 = vset.pattern.permute.xlu1 %v787_v7  ;;  %p769_p3 = por %p768_p2, %p767_p1 }
   0xb   :  { %53 = vperm.xlu1 %739, %v850_v6  }
   0xc   :  { %p770_p4 = pnand %p769_p3, %p763_p0 }
   0xe   :  { %749 = vset.pattern.permute.xlu0 %v787_v7 }
   0xf   :  { %38 = vperm.xlu0 %749, %v824_v1   ;;  %741 = vset.pattern.permute.xlu1 %v786_v2 }
  0x10   :  { %151 = vperm.xlu1 %741, %v850_v6  }
  0x13   :  { %43 = vperm.xlu0 %749, %v838_v4  }
  0x14   :  { %742 = vset.pattern.permute.xlu1 %v787_v7 }
  0x15   :  { %58 = vperm.xlu1 %742, %v860_v8  }
  0x17   :  { %48 = vperm.xlu0 %749, %v819_v0  }
  0x19   :  { %743 = vset.pattern.permute.xlu1 %v786_v2 }
  0x1a   :  { %155 = vperm.xlu1 %743, %v860_v8  }
  0x1b   :  { %63 = vperm.xlu0 %749, %v868_v9  }
  0x1e   :  { %159 = vperm.xlu1 %743, %v868_v9  }
  0x1f   :  { %68 = vperm.xlu0 %749, %v833_v3  }
  0x22   :  { %744 = vset.pattern.permute.xlu1 %v787_v7 }
  0x23   :  { %83 = vperm.xlu0 %749, %v878_v10   ;;  %73 = vperm.xlu1 %744, %v883_v11  }
  0x27   :  { %88 = vperm.xlu0 %749, %v845_v5   ;;  %745 = vset.pattern.permute.xlu1 %v786_v2 }
  0x28   :  { %167 = vperm.xlu1 %745, %v883_v11  }
  0x2b   :  { %103 = vperm.xlu0 %749, %v893_v12  }
  0x2c   :  { %746 = vset.pattern.permute.xlu1 %v787_v7 }
  0x2d   :  { %78 = vperm.xlu1 %746, %v28_v13  }
  0x2f   :  { %108 = vperm.xlu0 %749, %v902_v14  }
  0x31   :  { %747 = vset.pattern.permute.xlu1 %v786_v2 }
  0x32   :  { %171 = vperm.xlu1 %747, %v28_v13  }
  0x33   :  { %754 = vset.pattern.permute.xlu0 %v786_v2 }
  0x34   :  { %195 = vperm.xlu0 %754, %v902_v14  }
  0x36   :  { %175 = vperm.xlu1 %747, %v878_v10  }
  0x38   :  { %757 = vset.pattern.permute.xlu0 %v788_v20 }
  0x39   :  { %255 = vperm.xlu0 %757, %v838_v4  }
  0x3a   :  { %748 = vset.pattern.permute.xlu1 %v787_v7 }
  0x3b   :  { %93 = vperm.xlu1 %748, %v912_v15  }
  0x3d   :  { %758 = vset.pattern.permute.xlu0 %v789_v21 }
  0x3e   :  { %476 = vperm.xlu0 %758, %v824_v1  }
  0x3f   :  { %750 = vset.pattern.permute.xlu1 %v786_v2 }
  0x40   :  { %183 = vperm.xlu1 %750, %v912_v15  }
  0x42   :  { %484 = vperm.xlu0 %758, %v819_v0  }
  0x44   :  { %751 = vset.pattern.permute.xlu1 %v787_v7 }
  0x45   :  { %98 = vperm.xlu1 %751, %v920_v16  }
  0x46   :  { %488 = vperm.xlu0 %758, %v850_v6  }
  0x49   :  { %752 = vset.pattern.permute.xlu1 %v786_v2 }
  0x4a   :  { %187 = vperm.xlu1 %752, %v920_v16   ;;  %492 = vperm.xlu0 %758, %v860_v8  }
  0x4e   :  { %191 = vperm.xlu1 %752, %v893_v12   ;;  %496 = vperm.xlu0 %758, %v868_v9  }
  0x52   :  { %753 = vset.pattern.permute.xlu1 %v787_v7  ;;  %500 = vperm.xlu0 %758, %v833_v3  }
  0x53   :  { %113 = vperm.xlu1 %753, %v929_v17  }
  0x56   :  { %504 = vperm.xlu0 %758, %v883_v11  }
  0x57   :  { %755 = vset.pattern.permute.xlu1 %v786_v2 }
  0x58   :  { %199 = vperm.xlu1 %755, %v929_v17  }
  0x5a   :  { %508 = vperm.xlu0 %758, %v28_v13  }
  0x5c   :  { %756 = vset.pattern.permute.xlu1 %v788_v20 }
  0x5d   :  { %251 = vperm.xlu1 %756, %v824_v1  }
  0x5e   :  { %512 = vperm.xlu0 %758, %v878_v10  }
  0x61   :  { %259 = vperm.xlu1 %756, %v819_v0  }
  0x62   :  { %516 = vperm.xlu0 %758, %v845_v5  }
  0x65   :  { %263 = vperm.xlu1 %756, %v850_v6  }
  0x66   :  { %520 = vperm.xlu0 %758, %v912_v15  }
  0x69   :  { %759 = vset.pattern.permute.xlu1 %v789_v21 }
  0x6a   :  { %480 = vperm.xlu1 %759, %v838_v4   ;;  %524 = vperm.xlu0 %758, %v920_v16  }
  0x6e   :  { %760 = vset.pattern.permute.xlu1 %v788_v20  ;;  %528 = vperm.xlu0 %758, %v893_v12  }
  0x6f   :  { %267 = vperm.xlu1 %760, %v860_v8  }
  0x72   :  { %536 = vperm.xlu0 %758, %v929_v17  }
  0x73   :  { %271 = vperm.xlu1 %760, %v868_v9  }
  0x77   :  { %275 = vperm.xlu1 %760, %v833_v3  }
  0x7b   :  { %279 = vperm.xlu1 %760, %v883_v11  }
  0x7f   :  { %283 = vperm.xlu1 %760, %v28_v13  }
  0x81   :  { %v140_v22 = vpop.permute.xlu1 %139  ;;  %v148_v23 = vpop.permute.xlu0 %147 }
  0x83   :  { %287 = vperm.xlu1 %760, %v878_v10  }
  0x85   :  { %v144_v24 = vpop.permute.xlu1 %143  ;;  %v956_v25 = vpop.permute.xlu0 %163 }
  0x87   :  { %291 = vperm.xlu1 %760, %v845_v5  }
  0x89   :  { %v960_v26 = vpop.permute.xlu0 %179 }
  0x8a   :  { %v54_v27 = vpop.permute.xlu1 %53 }
  0x8b   :  { %v125_v36 = vmul.f32 %v965_v28, %v54_v27  ;;  %295 = vperm.xlu1 %760, %v912_v15  }
  0x8e   :  { %v39_v29 = vpop.permute.xlu0 %38 }
  0x8f   :  { %v122_v30 = vmul.f32 %v965_v28, %v39_v29  ;;  %v152_v31 = vpop.permute.xlu1 %151  ;;  %299 = vperm.xlu1 %760, %v920_v16  }
  0x90   :  { %v205_v40 = vadd.f32 %v152_v31, %v125_v36 }
  0x91   :  { %v202_v33 = vadd.f32 %v140_v22, %v122_v30 }
  0x92   :  { %v44_v32 = vpop.permute.xlu0 %43  ;;  %v221_v48 = vmax.f32 %v205_v40, 0.0 }
  0x93   :  { %v123_v34 = vmul.f32 %v965_v28, %v44_v32  ;;  %v218_v39 = vmax.f32 %v202_v33, 0.0  ;;  %303 = vperm.xlu1 %760, %v893_v12  }
  0x94   :  { %v59_v35 = vpop.permute.xlu1 %58 }
  0x95   :  { %v203_v37 = vadd.f32 %v144_v24, %v123_v34  ;;  %v126_v46 = vmul.f32 %v965_v28, %v59_v35 }
  0x96   :  { %v49_v38 = vpop.permute.xlu0 %48 }
  0x97   :  { %v219_v41 = vmax.f32 %v203_v37, 0.0  ;;  %v124_v42 = vmul.f32 %v965_v28, %v49_v38  ;;  %307 = vperm.xlu1 %760, %v902_v14  }
  0x99   :  { %v685_v43 = vpack.c.bf16 %v219_v41, %v218_v39  ;;  %v204_v44 = vadd.f32 %v148_v23, %v124_v42  ;;  %v156_v45 = vpop.permute.xlu1 %155 }
  0x9a   :  { %v64_v47 = vpop.permute.xlu0 %63  ;;  %v206_v51 = vadd.f32 %v156_v45, %v126_v46 }
  0x9b   :  { %v220_v49 = vmax.f32 %v204_v44, 0.0  ;;  %v127_v50 = vmul.f32 %v965_v28, %v64_v47  ;;  %686 = vmatprep.subr.bf16.mxu0 %v685_v43  ;;  %717 = vmatprep.subr.bf16.mxu1 %v685_v43 }
  0x9c   :  { %688 = vmatpush3.bf16.msra.mxu0 %v685_v43  ;;  %725 = vmatpush3.bf16.msra.mxu1 %v685_v43  ;;  %v222_v55 = vmax.f32 %v206_v51, 0.0  ;;  %v237_v51 = vld [vmem:[%s1059_s2 + $0x18] sm:$0xff] }
  0x9d   :  { %v689_v52 = vpack.c.bf16 %v221_v48, %v220_v49  ;;  %v160_v53 = vpop.permute.xlu1 %159  ;;  %311 = vperm.xlu1 %760, %v929_v17   ;;  %v235_v48 = vld [vmem:[%s1059_s2 + $0x8] sm:$0xff] }
  0x9e   :  { %v207_v54 = vadd.f32 %v160_v53, %v127_v50  ;;  %v69_v57 = vpop.permute.xlu0 %68  ;;  %v243_v49 = vld [vmem:[%s1059_s2 + $0x48] sm:$0xff]  ;;  %v244_v50 = vld [vmem:[%s1059_s2 + $0x50] sm:$0xff]  ;;  %v238_v53 = vld [vmem:[%s1059_s2 + $0x20] sm:$0xff] }
  0x9f   :  { %690 = vmatprep.subr.bf16.mxu0 %v689_v52  ;;  %718 = vmatprep.subr.bf16.mxu1 %v689_v52  ;;  %v128_v59 = vmul.f32 %v965_v28, %v69_v57  ;;  %v240_v57 = vld [vmem:[%s1059_s2 + $0x30] sm:$0xff] }
  0xa0   :  { %v223_v56 = vmax.f32 %v207_v54, 0.0  ;;  %692 = vmatpush3.bf16.msra.mxu0 %v689_v52  ;;  %726 = vmatpush3.bf16.msra.mxu1 %v689_v52  ;;  %v245_v52 = vld [vmem:[%s1059_s2 + $0x58] sm:$0xff]  ;;  %v246_v54 = vld [vmem:[%s1059_s2 + $0x60] sm:$0xff] }
  0xa1   :  { %v208_v61 = vadd.f32 %v956_v25, %v128_v59  ;;  %761 = vset.pattern.permute.xlu1 %v789_v21  ;;  %v241_v59 = vld [vmem:[%s1059_s2 + $0x38] sm:$0xff] }
  0xa2   :  { %v693_v58 = vpack.c.bf16 %v223_v56, %v222_v55  ;;  %v74_v60 = vpop.permute.xlu1 %73  ;;  %532 = vperm.xlu1 %761, %v902_v14   ;;  %v84_v5 = vpop.permute.xlu0 %83  ;;  %v239_v55 = vld [vmem:[%s1059_s2 + $0x28] sm:$0xff] }
  0xa3   :  { %v129_v62 = vmul.f32 %v965_v28, %v74_v60  ;;  %v224_v1 = vmax.f32 %v208_v61, 0.0  ;;  %v131_v7 = vmul.f32 %v965_v28, %v84_v5  ;;  %v247_v56 = vld [vmem:[%s1059_s2 + $0x68] sm:$0xff]  ;;  %v249_v60 = vld [vmem:[%s1059_s2 + $0x78] sm:$0xff] }
  0xa4   :  { %694 = vmatprep.subr.bf16.mxu0 %v693_v58  ;;  %719 = vmatprep.subr.bf16.mxu1 %v693_v58 }
  0xa5   :  { %696 = vmatpush3.bf16.msra.mxu0 %v693_v58  ;;  %727 = vmatpush3.bf16.msra.mxu1 %v693_v58  ;;  %v248_v58 = vld [vmem:[%s1059_s2 + $0x70] sm:$0xff] }
  0xa6   :  { %v89_v12 = vpop.permute.xlu0 %88 }
  0xa7   :  { %v168_v63 = vpop.permute.xlu1 %167  ;;  %v132_v14 = vmul.f32 %v965_v28, %v89_v12 }
  0xa8   :  { %v209_v0 = vadd.f32 %v168_v63, %v129_v62 }
  0xa9   :  { %v212_v18 = vadd.f32 %v960_v26, %v132_v14 }
  0xaa   :  { %v225_v2 = vmax.f32 %v209_v0, 0.0  ;;  %v104_v27 = vpop.permute.xlu0 %103 }
  0xab   :  { %v228_v22 = vmax.f32 %v212_v18, 0.0  ;;  %v135_v31 = vmul.f32 %v965_v28, %v104_v27 }
  0xac   :  { %v697_v3 = vpack.c.bf16 %v225_v2, %v224_v1  ;;  %v79_v4 = vpop.permute.xlu1 %78 }
  0xad   :  { %v130_v8 = vmul.f32 %v965_v28, %v79_v4 }
  0xae   :  { %698 = vmatprep.subr.bf16.mxu0 %v697_v3  ;;  %720 = vmatprep.subr.bf16.mxu1 %v697_v3  ;;  %v109_v26 = vpop.permute.xlu0 %108 }
  0xaf   :  { %700 = vmatpush3.bf16.msra.mxu0 %v697_v3  ;;  %728 = vmatpush3.bf16.msra.mxu1 %v697_v3  ;;  %v136_v37 = vmul.f32 %v965_v28, %v109_v26 }
  0xb1   :  { %v172_v6 = vpop.permute.xlu1 %171 }
  0xb2   :  { %v210_v9 = vadd.f32 %v172_v6, %v130_v8 }
  0xb3   :  { %v196_v40 = vpop.permute.xlu0 %195 }
  0xb4   :  { %v226_v13 = vmax.f32 %v210_v9, 0.0  ;;  %v216_v41 = vadd.f32 %v196_v40, %v136_v37 }
  0xb5   :  { %v176_v10 = vpop.permute.xlu1 %175 }
  0xb6   :  { %v211_v11 = vadd.f32 %v176_v10, %v131_v7  ;;  %v232_v45 = vmax.f32 %v216_v41, 0.0 }
  0xb8   :  { %v227_v15 = vmax.f32 %v211_v11, 0.0  ;;  %v256_v0 = vpop.permute.xlu0 %255 }
  0xba   :  { %v701_v16 = vpack.c.bf16 %v227_v15, %v226_v13  ;;  %v94_v17 = vpop.permute.xlu1 %93 }
  0xbb   :  { %v133_v19 = vmul.f32 %v965_v28, %v94_v17 }
  0xbc   :  { %702 = vmatprep.subr.bf16.mxu0 %v701_v16  ;;  %721 = vmatprep.subr.bf16.mxu1 %v701_v16 }
  0xbd   :  { %704 = vmatpush3.bf16.msra.mxu0 %v701_v16  ;;  %729 = vmatpush3.bf16.msra.mxu1 %v701_v16  ;;  %v477_v2 = vpop.permute.xlu0 %476 }
  0xbf   :  { %v184_v20 = vpop.permute.xlu1 %183 }
  0xc0   :  { %v213_v21 = vadd.f32 %v184_v20, %v133_v19 }
  0xc1   :  { %v485_v4 = vpop.permute.xlu0 %484 }
  0xc2   :  { %v229_v23 = vmax.f32 %v213_v21, 0.0 }
  0xc4   :  { %v705_v24 = vpack.c.bf16 %v229_v23, %v228_v22  ;;  %v99_v25 = vpop.permute.xlu1 %98 }
  0xc5   :  { %v134_v30 = vmul.f32 %v965_v28, %v99_v25  ;;  %v489_v6 = vpop.permute.xlu0 %488 }
  0xc6   :  { %706 = vmatprep.subr.bf16.mxu0 %v705_v24  ;;  %722 = vmatprep.subr.bf16.mxu1 %v705_v24 }
  0xc7   :  { %708 = vmatpush3.bf16.msra.mxu0 %v705_v24  ;;  %730 = vmatpush3.bf16.msra.mxu1 %v705_v24 }
  0xc9   :  { %v188_v29 = vpop.permute.xlu1 %187  ;;  %v493_v8 = vpop.permute.xlu0 %492 }
  0xca   :  { %v214_v32 = vadd.f32 %v188_v29, %v134_v30 }
  0xcc   :  { %v230_v35 = vmax.f32 %v214_v32, 0.0 }
  0xcd   :  { %v192_v33 = vpop.permute.xlu1 %191  ;;  %v497_v10 = vpop.permute.xlu0 %496 }
  0xce   :  { %v215_v34 = vadd.f32 %v192_v33, %v135_v31 }
  0xd0   :  { %v231_v36 = vmax.f32 %v215_v34, 0.0 }
  0xd1   :  { %v501_v12 = vpop.permute.xlu0 %500 }
  0xd2   :  { %v709_v38 = vpack.c.bf16 %v231_v36, %v230_v35  ;;  %v114_v39 = vpop.permute.xlu1 %113 }
  0xd3   :  { %v137_v42 = vmul.f32 %v965_v28, %v114_v39  ;;  %v236_v28 = vld [vmem:[%s1059_s2 + $0x10] sm:$0xff] }
  0xd4   :  { %710 = vmatprep.subr.bf16.mxu0 %v709_v38  ;;  %723 = vmatprep.subr.bf16.mxu1 %v709_v38 }
  0xd5   :  { %712 = vmatpush3.bf16.msra.mxu0 %v709_v38  ;;  %731 = vmatpush3.bf16.msra.mxu1 %v709_v38  ;;  %v505_v15 = vpop.permute.xlu0 %504 }
  0xd7   :  { %v200_v43 = vpop.permute.xlu1 %199 }
  0xd8   :  { %v217_v44 = vadd.f32 %v200_v43, %v137_v42 }
  0xd9   :  { %v509_v16 = vpop.permute.xlu0 %508 }
  0xda   :  { %v233_v46 = vmax.f32 %v217_v44, 0.0 }
  0xdc   :  { %v713_v47 = vpack.c.bf16 %v233_v46, %v232_v45  ;;  %v252_v61 = vpop.permute.xlu1 %251 }
  0xdd   :  { %v513_v24 = vpop.permute.xlu0 %512 }
  0xde   :  { %714 = vmatprep.subr.bf16.mxu0 %v713_v47  ;;  %724 = vmatprep.subr.bf16.mxu1 %v713_v47 }
  0xdf   :  { %716 = vmatpush3.bf16.msra.mxu0 %v713_v47  ;;  %732 = vmatpush3.bf16.msra.mxu1 %v713_v47 }
  0xe0   :  { %v260_v62 = vpop.permute.xlu1 %259 }
  0xe1   :  { %v517_v47 = vpop.permute.xlu0 %516 }
  0xe2   :  { %662 = vmatmul.mubr.f32.vlgmr.msra.gmra.mrb[0].mxu0 %v235_v48  ;;  %674 = vmatmul.mubr.f32.vlgmr.msra.gmra.mrb[0].mxu1 %v243_v49 }
  0xe3   :  { %664 = vmatprep.mubr.f32.mxu0 %v236_v28  ;;  %676 = vmatprep.mubr.f32.mxu1 %v244_v50 }
  0xe4   :  { %v264_v63 = vpop.permute.xlu1 %263 }
  0xe6   :  { %665 = vmatmul.mubr.f32.gmra.mrb[2].mxu0 %v237_v51  ;;  %677 = vmatmul.mubr.f32.gmra.mrb[2].mxu1 %v245_v52 }
  0xe7   :  { %667 = vmatprep.mubr.f32.mxu0 %v238_v53  ;;  %679 = vmatprep.mubr.f32.mxu1 %v246_v54 }
  0xe9   :  { %v481_v1 = vpop.permute.xlu1 %480 }
  0xea   :  { %668 = vmatmul.mubr.f32.gmra.mrb[4].mxu0 %v239_v55  ;;  %680 = vmatmul.mubr.f32.gmra.mrb[4].mxu1 %v247_v56 }
  0xeb   :  { %670 = vmatprep.mubr.f32.mxu0 %v240_v57  ;;  %682 = vmatprep.mubr.f32.mxu1 %v248_v58 }
  0xee   :  { %671 = vmatmul.mubr.f32.gmra.mrb[6].mxu0 %v241_v59  ;;  %683 = vmatmul.mubr.f32.gmra.mrb[6].mxu1 %v249_v60  ;;  %v268_v3 = vpop.permute.xlu1 %267 }
  0xf2   :  { %v272_v5 = vpop.permute.xlu1 %271 }
  0xf6   :  { %v276_v7 = vpop.permute.xlu1 %275 }
  0xfa   :  { %v280_v9 = vpop.permute.xlu1 %279 }
  0xfe   :  { %v284_v11 = vpop.permute.xlu1 %283 }
 0x102   :  { %v288_v13 = vpop.permute.xlu1 %287 }
 0x106   :  { %v292_v14 = vpop.permute.xlu1 %291 }
 0x10a   :  { %v296_v17 = vpop.permute.xlu1 %295 }
 0x10e   :  { %v300_v36 = vpop.permute.xlu1 %299 }
 0x112   :  { %v304_v60 = vpop.permute.xlu1 %303 }
 0x1b5   :  { %v663_v18 = vpop.f32.mrb[0].mxu0  ;;  %v675_v19 = vpop.f32.mrb[0].mxu1 }
 0x1b6   :  { %v386_v20 = vadd.f32 %v663_v18, %v256_v0  ;;  %v380_v21 = vpop.f32.mrb[1].mxu0  ;;  %v420_v22 = vpop.f32.mrb[1].mxu1 }
 0x1b7   :  { %v381_v23 = vadd.f32 %v380_v21, %v252_v61  ;;  %v421_v56 = vadd.f32 %v420_v22, %v284_v11  ;;  %v426_v61 = vadd.f32 %v675_v19, %v288_v13 }
 0x1b8   :  { %v460_v25 = vmax.f32 %v386_v20, 0.0 }
 0x1b9   :  { %v459_v27 = vmax.f32 %v381_v23, 0.0  ;;  %v666_v29 = vpop.f32.mrb[2].mxu0  ;;  %v678_v30 = vpop.f32.mrb[2].mxu1  ;;  %v468_v18 = vmax.f32 %v426_v61, 0.0 }
 0x1ba   :  { %v540_v31 = vmul.f32 %v481_v1, %v460_v25  ;;  %v396_v32 = vadd.f32 %v666_v29, %v264_v63  ;;  %v390_v26 = vpop.f32.mrb[3].mxu0  ;;  %v430_v33 = vpop.f32.mrb[3].mxu1  ;;  %v436_v20 = vadd.f32 %v678_v30, %v296_v17 }
 0x1bb   :  { %v539_v34 = vmul.f32 %v477_v2, %v459_v27  ;;  %v391_v35 = vadd.f32 %v390_v26, %v260_v62  ;;  %v521_v2 = vpop.permute.xlu0 %520  ;;  %v308_v23 = vpop.permute.xlu1 %307  ;;  %v548_v13 = vmul.f32 %v513_v24, %v468_v18 }
 0x1bc   :  { %v462_v38 = vmax.f32 %v396_v32, 0.0 }
 0x1bd   :  { %v555_v37 = vadd.f32 %v540_v31, %v539_v34  ;;  %v461_v39 = vmax.f32 %v391_v35, 0.0  ;;  %v669_v40 = vpop.f32.mrb[4].mxu0  ;;  %v681_v41 = vpop.f32.mrb[4].mxu1 }
 0x1be   :  { %v406_v42 = vadd.f32 %v669_v40, %v272_v5  ;;  %v400_v43 = vpop.f32.mrb[5].mxu0  ;;  %v440_v44 = vpop.f32.mrb[5].mxu1  ;;  %v542_v48 = vmul.f32 %v489_v6, %v462_v38  ;;  %v446_v19 = vadd.f32 %v681_v41, %v304_v60 }
 0x1bf   :  { %v541_v45 = vmul.f32 %v485_v4, %v461_v39  ;;  %v401_v46 = vadd.f32 %v400_v43, %v268_v3  ;;  %v467_v3 = vmax.f32 %v421_v56, 0.0  ;;  %v431_v4 = vadd.f32 %v430_v33, %v292_v14  ;;  %v525_v25 = vpop.permute.xlu0 %524 }
 0x1c0   :  { %v464_v28 = vmax.f32 %v406_v42, 0.0  ;;  %v441_v22 = vadd.f32 %v440_v44, %v300_v36  ;;  %v472_v33 = vmax.f32 %v446_v19, 0.0 }
 0x1c1   :  { %v556_v49 = vadd.f32 %v555_v37, %v541_v45  ;;  %v463_v50 = vmax.f32 %v401_v46, 0.0  ;;  %v672_v51 = vpop.f32.mrb[6].mxu0  ;;  %v684_v52 = vpop.f32.mrb[6].mxu1  ;;  %v547_v11 = vmul.f32 %v509_v16, %v467_v3 }
 0x1c2   :  { %v416_v53 = vadd.f32 %v672_v51, %v280_v9  ;;  %v410_v54 = vpop.f32.mrb[7].mxu0  ;;  %v450_v55 = vpop.f32.mrb[7].mxu1  ;;  %v544_v62 = vmul.f32 %v497_v10, %v464_v28  ;;  %v470_v10 = vmax.f32 %v436_v20, 0.0  ;;  %v471_v31 = vmax.f32 %v441_v22, 0.0 }
 0x1c3   :  { %v543_v57 = vmul.f32 %v493_v8, %v463_v50  ;;  %v557_v58 = vadd.f32 %v556_v49, %v542_v48  ;;  %v411_v59 = vadd.f32 %v410_v54, %v276_v7  ;;  %v469_v8 = vmax.f32 %v431_v4, 0.0  ;;  %v529_v30 = vpop.permute.xlu0 %528 }
 0x1c4   :  { %v466_v0 = vmax.f32 %v416_v53, 0.0  ;;  %v451_v14 = vadd.f32 %v450_v55, %v308_v23  ;;  %v550_v26 = vmul.f32 %v521_v2, %v470_v10  ;;  %v551_v34 = vmul.f32 %v525_v25, %v471_v31 }
 0x1c5   :  { %v558_v63 = vadd.f32 %v557_v58, %v543_v57  ;;  %v465_v1 = vmax.f32 %v411_v59, 0.0  ;;  %v549_v29 = vmul.f32 %v517_v47, %v469_v8  ;;  %v552_v37 = vmul.f32 %v529_v30, %v472_v33 }
 0x1c6   :  { %v546_v9 = vmul.f32 %v505_v15, %v466_v0  ;;  %v473_v16 = vmax.f32 %v451_v14, 0.0  ;;  %v577_v28 = vstv %s1060_s3 }
 0x1c7   :  { %v545_v5 = vmul.f32 %v501_v12, %v465_v1  ;;  %v559_v6 = vadd.f32 %v558_v63, %v544_v62  ;;  %v312_v12 = vpop.permute.xlu1 %311  ;;  %v537_v41 = vpop.permute.xlu0 %536 }
 0x1c8   :  { %v456_v17 = vadd.f32 %v684_v52, %v312_v12 }
 0x1c9   :  { %v560_v21 = vadd.f32 %v559_v6, %v545_v5 }
 0x1ca   :  { %v474_v38 = vmax.f32 %v456_v17, 0.0 }
 0x1cb   :  { %v561_v7 = vadd.f32 %v560_v21, %v546_v9  ;;  %v533_v36 = vpop.permute.xlu1 %532 }
 0x1cc   :  { %v553_v39 = vmul.f32 %v533_v36, %v473_v16  ;;  %v554_v42 = vmul.f32 %v537_v41, %v474_v38 }
 0x1cd   :  { %v562_v27 = vadd.f32 %v561_v7, %v547_v11 }
 0x1cf   :  { %v563_v32 = vadd.f32 %v562_v27, %v548_v13 }
 0x1d1   :  { %v564_v15 = vadd.f32 %v563_v32, %v549_v29 }
 0x1d3   :  { %v565_v35 = vadd.f32 %v564_v15, %v550_v26 }
 0x1d5   :  { %v566_v24 = vadd.f32 %v565_v35, %v551_v34 }
 0x1d7   :  { %v567_v40 = vadd.f32 %v566_v24, %v552_v37 }
 0x1d9   :  { %v568_v43 = vadd.f32 %v567_v40, %v553_v39 }
 0x1db   :  { %v569_v44 = vadd.f32 %v568_v43, %v554_v42 }
 0x1dd   :  { %v570_v45 = vrot.slane %v569_v44, 4 }
 0x1df   :  { %v571_v46 = vadd.f32 %v570_v45, %v569_v44 }
 0x1e1   :  { %v572_v47 = vrot.slane %v571_v46, 2 }
 0x1e3   :  { %v573_v48 = vadd.f32 %v572_v47, %v571_v46 }
 0x1e5   :  { %v574_v49 = vrot.slane %v573_v48, 1 }
 0x1e7   :  { %v575_v50 = vadd.f32 %v574_v49, %v573_v48 }
 0x1e9   :  { %v578_v51 = vadd.f32 %v577_v28, %v575_v50 }
 0x1eb   :  { %v579_v52 = vand.u32 2147483647, %v578_v51 }
 0x1ed   :  { %v580_v53 = vsub.f32 0.0, %v579_v52 }
 0x1ef   :  { %581 = vst [vmem:[#allocation3] sm:$0x1] %v580_v53 }
 0x1f0   :  { %773 = shalt.err (!%p770_p4)
}
 0x1f1   :  { %s774_s3 = scalar_lea.hbm %s1061_s4, 16 }
 0x1f2   :  { %p775_p5 = scmp.ne.s32.totalorder %s1061_s4, %s774_s3  ;;  %p778_p6 = scmp.lt.u32.totalorder %s774_s3, %s1061_s4 }
 0x1f4   :  { %p780_p7 = pnand %p778_p6, %p775_p5 }
 0x1f6   :  { %783 = shalt.err (!%p780_p7)
}
 0x1f7   :  { %591 = dma.vmem_to_hbm [thread:$0]  %s589_s27, 16, %s1061_s4, [#allocation4]  }
 0x1f8   :  { %784 = dma.done.wait [#allocation4], 16  }
 0x1f9   :  { %785 = vsyncadd [#allocation4], 4294967280 }
 0x1fa   :  { %595 = vsyncpa [#allocation4], 1 }

// kernel: tpu_custom_call.1
= control target key start
LH: loop header
LB: loop body
LE: loop exit
PB: predicated region body
PF: predicated region fallthrough
CT: control target
= control target key end

     0   :  { %v786_v2 = vmov 1   ;;  %s1057_s0 = inlined_call_operand.vmem [shape: f32[1,128], index: 0, kind: input, shape index: {}]   ;;  %s1058_s1 = inlined_call_operand.vmem [shape: f32[128,8], index: 1, kind: input, shape index: {}]   ;;  %s1059_s2 = inlined_call_operand.vmem [shape: f32[128,128], index: 2, kind: input, shape index: {}]   ;;  %s1060_s3 = inlined_call_operand.<no memory space> [shape: f32[1], index: 3, kind: input, shape index: {}]   ;;  %s1061_s4 = inlined_call_operand.hbm [shape: f32[1,128], index: 4, kind: output, shape index: {}]  }
   0x1   :  { %v819_v0 = vld [vmem:[%s1058_s1 + $0x10] sm:$0xff]  ;;  %v824_v1 = vld [vmem:[%s1058_s1] sm:$0xff]  ;;  %740 = vset.pattern.permute.xlu0 %v786_v2  ;;  %738 = vset.pattern.permute.xlu1 %v786_v2  ;;  %v838_v4 = vld [vmem:[%s1058_s1 + $0x8] sm:$0xff] }
   0x2   :  { %147 = vperm.xlu0 %740, %v819_v0   ;;  %139 = vperm.xlu1 %738, %v824_v1   ;;  %v833_v3 = vld [vmem:[%s1058_s1 + $0x30] sm:$0xff] }
   0x3   :  { %10 = vsyncpa [#allocation4], 0  ;;  %v845_v5 = vld [vmem:[%s1058_s1 + $0x50] sm:$0xff]  ;;  %v850_v6 = vld [vmem:[%s1058_s1 + $0x18] sm:$0xff]  ;;  %v787_v7 = vmov 0   ;;  %v788_v20 = vmov 2  }
   0x4   :  { %v860_v8 = vld [vmem:[%s1058_s1 + $0x20] sm:$0xff]  ;;  %v868_v9 = vld [vmem:[%s1058_s1 + $0x28] sm:$0xff]  ;;  %v883_v11 = vld [vmem:[%s1058_s1 + $0x38] sm:$0xff]  ;;  %v789_v21 = vmov 3   ;;  %s790_s26 = smov [#allocation3]  }
   0x5   :  { %v878_v10 = vld [vmem:[%s1058_s1 + $0x48] sm:$0xff]  ;;  %v28_v13 = vld [vmem:[%s1058_s1 + $0x40] sm:$0xff]  ;;  %v902_v14 = vld [vmem:[%s1058_s1 + $0x70] sm:$0xff]  ;;  %s588_s27 = sshll.u32 %s790_s26, 4  ;;  %s589_s27 = int_to_ptr.vmem [resolvable:$true] %s588_s27 }
   0x6   :  { %163 = vperm.xlu0 %740, %v833_v3   ;;  %143 = vperm.xlu1 %738, %v838_v4   ;;  %v893_v12 = vld [vmem:[%s1058_s1 + $0x68] sm:$0xff]  ;;  %v912_v15 = vld [vmem:[%s1058_s1 + $0x58] sm:$0xff]  ;;  %v920_v16 = vld [vmem:[%s1058_s1 + $0x60] sm:$0xff]  ;;  %s762_s28 = scalar_lea.vmem %s589_s27, 16  ;;  %s766_s29 = scalar_lea.vmem %s589_s27, 32 }
   0x7   :  { %v929_v17 = vld [vmem:[%s1058_s1 + $0x78] sm:$0xff]  ;;  %v234_v18 = vld [vmem:[%s1059_s2] sm:$0xff]  ;;  %p763_p0 = scmp.ne.s32.totalorder %s589_s27, %s762_s28  ;;  %p767_p1 = scmp.lt.s32.totalorder %s589_s27, %s589_s27 }
   0x8   :  { %v242_v19 = vld [vmem:[%s1059_s2 + $0x40] sm:$0xff]  ;;  %661 = vmatprep.mubr.f32.mxu0 %v234_v18  ;;  %p768_p2 = scmp.lt.s32.totalorder %s766_s29, %s762_s28 }
   0x9   :  { %673 = vmatprep.mubr.f32.mxu1 %v242_v19  ;;  %v965_v28 = vld [vmem:[%s1057_s0] ss:$0 sm:$0xff] }
   0xa   :  { %179 = vperm.xlu0 %740, %v845_v5   ;;  %739 = vset.pattern.permute.xlu1 %v787_v7  ;;  %p769_p3 = por %p768_p2, %p767_p1 }
   0xb   :  { %53 = vperm.xlu1 %739, %v850_v6  }
   0xc   :  { %p770_p4 = pnand %p769_p3, %p763_p0 }
   0xe   :  { %749 = vset.pattern.permute.xlu0 %v787_v7 }
   0xf   :  { %38 = vperm.xlu0 %749, %v824_v1   ;;  %741 = vset.pattern.permute.xlu1 %v786_v2 }
  0x10   :  { %151 = vperm.xlu1 %741, %v850_v6  }
  0x13   :  { %43 = vperm.xlu0 %749, %v838_v4  }
  0x14   :  { %742 = vset.pattern.permute.xlu1 %v787_v7 }
  0x15   :  { %58 = vperm.xlu1 %742, %v860_v8  }
  0x17   :  { %48 = vperm.xlu0 %749, %v819_v0  }
  0x19   :  { %743 = vset.pattern.permute.xlu1 %v786_v2 }
  0x1a   :  { %155 = vperm.xlu1 %743, %v860_v8  }
  0x1b   :  { %63 = vperm.xlu0 %749, %v868_v9  }
  0x1e   :  { %159 = vperm.xlu1 %743, %v868_v9  }
  0x1f   :  { %68 = vperm.xlu0 %749, %v833_v3  }
  0x22   :  { %744 = vset.pattern.permute.xlu1 %v787_v7 }
  0x23   :  { %83 = vperm.xlu0 %749, %v878_v10   ;;  %73 = vperm.xlu1 %744, %v883_v11  }
  0x27   :  { %88 = vperm.xlu0 %749, %v845_v5   ;;  %745 = vset.pattern.permute.xlu1 %v786_v2 }
  0x28   :  { %167 = vperm.xlu1 %745, %v883_v11  }
  0x2b   :  { %103 = vperm.xlu0 %749, %v893_v12  }
  0x2c   :  { %746 = vset.pattern.permute.xlu1 %v787_v7 }
  0x2d   :  { %78 = vperm.xlu1 %746, %v28_v13  }
  0x2f   :  { %108 = vperm.xlu0 %749, %v902_v14  }
  0x31   :  { %747 = vset.pattern.permute.xlu1 %v786_v2 }
  0x32   :  { %171 = vperm.xlu1 %747, %v28_v13  }
  0x33   :  { %754 = vset.pattern.permute.xlu0 %v786_v2 }
  0x34   :  { %195 = vperm.xlu0 %754, %v902_v14  }
  0x36   :  { %175 = vperm.xlu1 %747, %v878_v10  }
  0x38   :  { %757 = vset.pattern.permute.xlu0 %v788_v20 }
  0x39   :  { %255 = vperm.xlu0 %757, %v838_v4  }
  0x3a   :  { %748 = vset.pattern.permute.xlu1 %v787_v7 }
  0x3b   :  { %93 = vperm.xlu1 %748, %v912_v15  }
  0x3d   :  { %758 = vset.pattern.permute.xlu0 %v789_v21 }
  0x3e   :  { %476 = vperm.xlu0 %758, %v824_v1  }
  0x3f   :  { %750 = vset.pattern.permute.xlu1 %v786_v2 }
  0x40   :  { %183 = vperm.xlu1 %750, %v912_v15  }
  0x42   :  { %484 = vperm.xlu0 %758, %v819_v0  }
  0x44   :  { %751 = vset.pattern.permute.xlu1 %v787_v7 }
  0x45   :  { %98 = vperm.xlu1 %751, %v920_v16  }
  0x46   :  { %488 = vperm.xlu0 %758, %v850_v6  }
  0x49   :  { %752 = vset.pattern.permute.xlu1 %v786_v2 }
  0x4a   :  { %187 = vperm.xlu1 %752, %v920_v16   ;;  %492 = vperm.xlu0 %758, %v860_v8  }
  0x4e   :  { %191 = vperm.xlu1 %752, %v893_v12   ;;  %496 = vperm.xlu0 %758, %v868_v9  }
  0x52   :  { %753 = vset.pattern.permute.xlu1 %v787_v7  ;;  %500 = vperm.xlu0 %758, %v833_v3  }
  0x53   :  { %113 = vperm.xlu1 %753, %v929_v17  }
  0x56   :  { %504 = vperm.xlu0 %758, %v883_v11  }
  0x57   :  { %755 = vset.pattern.permute.xlu1 %v786_v2 }
  0x58   :  { %199 = vperm.xlu1 %755, %v929_v17  }
  0x5a   :  { %508 = vperm.xlu0 %758, %v28_v13  }
  0x5c   :  { %756 = vset.pattern.permute.xlu1 %v788_v20 }
  0x5d   :  { %251 = vperm.xlu1 %756, %v824_v1  }
  0x5e   :  { %512 = vperm.xlu0 %758, %v878_v10  }
  0x61   :  { %259 = vperm.xlu1 %756, %v819_v0  }
  0x62   :  { %516 = vperm.xlu0 %758, %v845_v5  }
  0x65   :  { %263 = vperm.xlu1 %756, %v850_v6  }
  0x66   :  { %520 = vperm.xlu0 %758, %v912_v15  }
  0x69   :  { %759 = vset.pattern.permute.xlu1 %v789_v21 }
  0x6a   :  { %480 = vperm.xlu1 %759, %v838_v4   ;;  %524 = vperm.xlu0 %758, %v920_v16  }
  0x6e   :  { %760 = vset.pattern.permute.xlu1 %v788_v20  ;;  %528 = vperm.xlu0 %758, %v893_v12  }
  0x6f   :  { %267 = vperm.xlu1 %760, %v860_v8  }
  0x72   :  { %536 = vperm.xlu0 %758, %v929_v17  }
  0x73   :  { %271 = vperm.xlu1 %760, %v868_v9  }
  0x77   :  { %275 = vperm.xlu1 %760, %v833_v3  }
  0x7b   :  { %279 = vperm.xlu1 %760, %v883_v11  }
  0x7f   :  { %283 = vperm.xlu1 %760, %v28_v13  }
  0x81   :  { %v140_v22 = vpop.permute.xlu1 %139  ;;  %v148_v23 = vpop.permute.xlu0 %147 }
  0x83   :  { %287 = vperm.xlu1 %760, %v878_v10  }
  0x85   :  { %v144_v24 = vpop.permute.xlu1 %143  ;;  %v956_v25 = vpop.permute.xlu0 %163 }
  0x87   :  { %291 = vperm.xlu1 %760, %v845_v5  }
  0x89   :  { %v960_v26 = vpop.permute.xlu0 %179 }
  0x8a   :  { %v54_v27 = vpop.permute.xlu1 %53 }
  0x8b   :  { %v125_v36 = vmul.f32 %v965_v28, %v54_v27  ;;  %295 = vperm.xlu1 %760, %v912_v15  }
  0x8e   :  { %v39_v29 = vpop.permute.xlu0 %38 }
  0x8f   :  { %v122_v30 = vmul.f32 %v965_v28, %v39_v29  ;;  %v152_v31 = vpop.permute.xlu1 %151  ;;  %299 = vperm.xlu1 %760, %v920_v16  }
  0x90   :  { %v205_v40 = vadd.f32 %v152_v31, %v125_v36 }
  0x91   :  { %v202_v33 = vadd.f32 %v140_v22, %v122_v30 }
  0x92   :  { %v44_v32 = vpop.permute.xlu0 %43  ;;  %v221_v48 = vmax.f32 %v205_v40, 0.0 }
  0x93   :  { %v123_v34 = vmul.f32 %v965_v28, %v44_v32  ;;  %v218_v39 = vmax.f32 %v202_v33, 0.0  ;;  %303 = vperm.xlu1 %760, %v893_v12  }
  0x94   :  { %v59_v35 = vpop.permute.xlu1 %58 }
  0x95   :  { %v203_v37 = vadd.f32 %v144_v24, %v123_v34  ;;  %v126_v46 = vmul.f32 %v965_v28, %v59_v35 }
  0x96   :  { %v49_v38 = vpop.permute.xlu0 %48 }
  0x97   :  { %v219_v41 = vmax.f32 %v203_v37, 0.0  ;;  %v124_v42 = vmul.f32 %v965_v28, %v49_v38  ;;  %307 = vperm.xlu1 %760, %v902_v14  }
  0x99   :  { %v685_v43 = vpack.c.bf16 %v219_v41, %v218_v39  ;;  %v204_v44 = vadd.f32 %v148_v23, %v124_v42  ;;  %v156_v45 = vpop.permute.xlu1 %155 }
  0x9a   :  { %v64_v47 = vpop.permute.xlu0 %63  ;;  %v206_v51 = vadd.f32 %v156_v45, %v126_v46 }
  0x9b   :  { %v220_v49 = vmax.f32 %v204_v44, 0.0  ;;  %v127_v50 = vmul.f32 %v965_v28, %v64_v47  ;;  %686 = vmatprep.subr.bf16.mxu0 %v685_v43  ;;  %717 = vmatprep.subr.bf16.mxu1 %v685_v43 }
  0x9c   :  { %688 = vmatpush3.bf16.msra.mxu0 %v685_v43  ;;  %725 = vmatpush3.bf16.msra.mxu1 %v685_v43  ;;  %v222_v55 = vmax.f32 %v206_v51, 0.0  ;;  %v237_v51 = vld [vmem:[%s1059_s2 + $0x18] sm:$0xff] }
  0x9d   :  { %v689_v52 = vpack.c.bf16 %v221_v48, %v220_v49  ;;  %v160_v53 = vpop.permute.xlu1 %159  ;;  %311 = vperm.xlu1 %760, %v929_v17   ;;  %v235_v48 = vld [vmem:[%s1059_s2 + $0x8] sm:$0xff] }
  0x9e   :  { %v207_v54 = vadd.f32 %v160_v53, %v127_v50  ;;  %v69_v57 = vpop.permute.xlu0 %68  ;;  %v243_v49 = vld [vmem:[%s1059_s2 + $0x48] sm:$0xff]  ;;  %v244_v50 = vld [vmem:[%s1059_s2 + $0x50] sm:$0xff]  ;;  %v238_v53 = vld [vmem:[%s1059_s2 + $0x20] sm:$0xff] }
  0x9f   :  { %690 = vmatprep.subr.bf16.mxu0 %v689_v52  ;;  %718 = vmatprep.subr.bf16.mxu1 %v689_v52  ;;  %v128_v59 = vmul.f32 %v965_v28, %v69_v57  ;;  %v240_v57 = vld [vmem:[%s1059_s2 + $0x30] sm:$0xff] }
  0xa0   :  { %v223_v56 = vmax.f32 %v207_v54, 0.0  ;;  %692 = vmatpush3.bf16.msra.mxu0 %v689_v52  ;;  %726 = vmatpush3.bf16.msra.mxu1 %v689_v52  ;;  %v245_v52 = vld [vmem:[%s1059_s2 + $0x58] sm:$0xff]  ;;  %v246_v54 = vld [vmem:[%s1059_s2 + $0x60] sm:$0xff] }
  0xa1   :  { %v208_v61 = vadd.f32 %v956_v25, %v128_v59  ;;  %761 = vset.pattern.permute.xlu1 %v789_v21  ;;  %v241_v59 = vld [vmem:[%s1059_s2 + $0x38] sm:$0xff] }
  0xa2   :  { %v693_v58 = vpack.c.bf16 %v223_v56, %v222_v55  ;;  %v74_v60 = vpop.permute.xlu1 %73  ;;  %532 = vperm.xlu1 %761, %v902_v14   ;;  %v84_v5 = vpop.permute.xlu0 %83  ;;  %v239_v55 = vld [vmem:[%s1059_s2 + $0x28] sm:$0xff] }
  0xa3   :  { %v129_v62 = vmul.f32 %v965_v28, %v74_v60  ;;  %v224_v1 = vmax.f32 %v208_v61, 0.0  ;;  %v131_v7 = vmul.f32 %v965_v28, %v84_v5  ;;  %v247_v56 = vld [vmem:[%s1059_s2 + $0x68] sm:$0xff]  ;;  %v249_v60 = vld [vmem:[%s1059_s2 + $0x78] sm:$0xff] }
  0xa4   :  { %694 = vmatprep.subr.bf16.mxu0 %v693_v58  ;;  %719 = vmatprep.subr.bf16.mxu1 %v693_v58 }
  0xa5   :  { %696 = vmatpush3.bf16.msra.mxu0 %v693_v58  ;;  %727 = vmatpush3.bf16.msra.mxu1 %v693_v58  ;;  %v248_v58 = vld [vmem:[%s1059_s2 + $0x70] sm:$0xff] }
  0xa6   :  { %v89_v12 = vpop.permute.xlu0 %88 }
  0xa7   :  { %v168_v63 = vpop.permute.xlu1 %167  ;;  %v132_v14 = vmul.f32 %v965_v28, %v89_v12 }
  0xa8   :  { %v209_v0 = vadd.f32 %v168_v63, %v129_v62 }
  0xa9   :  { %v212_v18 = vadd.f32 %v960_v26, %v132_v14 }
  0xaa   :  { %v225_v2 = vmax.f32 %v209_v0, 0.0  ;;  %v104_v27 = vpop.permute.xlu0 %103 }
  0xab   :  { %v228_v22 = vmax.f32 %v212_v18, 0.0  ;;  %v135_v31 = vmul.f32 %v965_v28, %v104_v27 }
  0xac   :  { %v697_v3 = vpack.c.bf16 %v225_v2, %v224_v1  ;;  %v79_v4 = vpop.permute.xlu1 %78 }
  0xad   :  { %v130_v8 = vmul.f32 %v965_v28, %v79_v4 }
  0xae   :  { %698 = vmatprep.subr.bf16.mxu0 %v697_v3  ;;  %720 = vmatprep.subr.bf16.mxu1 %v697_v3  ;;  %v109_v26 = vpop.permute.xlu0 %108 }
  0xaf   :  { %700 = vmatpush3.bf16.msra.mxu0 %v697_v3  ;;  %728 = vmatpush3.bf16.msra.mxu1 %v697_v3  ;;  %v136_v37 = vmul.f32 %v965_v28, %v109_v26 }
  0xb1   :  { %v172_v6 = vpop.permute.xlu1 %171 }
  0xb2   :  { %v210_v9 = vadd.f32 %v172_v6, %v130_v8 }
  0xb3   :  { %v196_v40 = vpop.permute.xlu0 %195 }
  0xb4   :  { %v226_v13 = vmax.f32 %v210_v9, 0.0  ;;  %v216_v41 = vadd.f32 %v196_v40, %v136_v37 }
  0xb5   :  { %v176_v10 = vpop.permute.xlu1 %175 }
  0xb6   :  { %v211_v11 = vadd.f32 %v176_v10, %v131_v7  ;;  %v232_v45 = vmax.f32 %v216_v41, 0.0 }
  0xb8   :  { %v227_v15 = vmax.f32 %v211_v11, 0.0  ;;  %v256_v0 = vpop.permute.xlu0 %255 }
  0xba   :  { %v701_v16 = vpack.c.bf16 %v227_v15, %v226_v13  ;;  %v94_v17 = vpop.permute.xlu1 %93 }
  0xbb   :  { %v133_v19 = vmul.f32 %v965_v28, %v94_v17 }
  0xbc   :  { %702 = vmatprep.subr.bf16.mxu0 %v701_v16  ;;  %721 = vmatprep.subr.bf16.mxu1 %v701_v16 }
  0xbd   :  { %704 = vmatpush3.bf16.msra.mxu0 %v701_v16  ;;  %729 = vmatpush3.bf16.msra.mxu1 %v701_v16  ;;  %v477_v2 = vpop.permute.xlu0 %476 }
  0xbf   :  { %v184_v20 = vpop.permute.xlu1 %183 }
  0xc0   :  { %v213_v21 = vadd.f32 %v184_v20, %v133_v19 }
  0xc1   :  { %v485_v4 = vpop.permute.xlu0 %484 }
  0xc2   :  { %v229_v23 = vmax.f32 %v213_v21, 0.0 }
  0xc4   :  { %v705_v24 = vpack.c.bf16 %v229_v23, %v228_v22  ;;  %v99_v25 = vpop.permute.xlu1 %98 }
  0xc5   :  { %v134_v30 = vmul.f32 %v965_v28, %v99_v25  ;;  %v489_v6 = vpop.permute.xlu0 %488 }
  0xc6   :  { %706 = vmatprep.subr.bf16.mxu0 %v705_v24  ;;  %722 = vmatprep.subr.bf16.mxu1 %v705_v24 }
  0xc7   :  { %708 = vmatpush3.bf16.msra.mxu0 %v705_v24  ;;  %730 = vmatpush3.bf16.msra.mxu1 %v705_v24 }
  0xc9   :  { %v188_v29 = vpop.permute.xlu1 %187  ;;  %v493_v8 = vpop.permute.xlu0 %492 }
  0xca   :  { %v214_v32 = vadd.f32 %v188_v29, %v134_v30 }
  0xcc   :  { %v230_v35 = vmax.f32 %v214_v32, 0.0 }
  0xcd   :  { %v192_v33 = vpop.permute.xlu1 %191  ;;  %v497_v10 = vpop.permute.xlu0 %496 }
  0xce   :  { %v215_v34 = vadd.f32 %v192_v33, %v135_v31 }
  0xd0   :  { %v231_v36 = vmax.f32 %v215_v34, 0.0 }
  0xd1   :  { %v501_v12 = vpop.permute.xlu0 %500 }
  0xd2   :  { %v709_v38 = vpack.c.bf16 %v231_v36, %v230_v35  ;;  %v114_v39 = vpop.permute.xlu1 %113 }
  0xd3   :  { %v137_v42 = vmul.f32 %v965_v28, %v114_v39  ;;  %v236_v28 = vld [vmem:[%s1059_s2 + $0x10] sm:$0xff] }
  0xd4   :  { %710 = vmatprep.subr.bf16.mxu0 %v709_v38  ;;  %723 = vmatprep.subr.bf16.mxu1 %v709_v38 }
  0xd5   :  { %712 = vmatpush3.bf16.msra.mxu0 %v709_v38  ;;  %731 = vmatpush3.bf16.msra.mxu1 %v709_v38  ;;  %v505_v15 = vpop.permute.xlu0 %504 }
  0xd7   :  { %v200_v43 = vpop.permute.xlu1 %199 }
  0xd8   :  { %v217_v44 = vadd.f32 %v200_v43, %v137_v42 }
  0xd9   :  { %v509_v16 = vpop.permute.xlu0 %508 }
  0xda   :  { %v233_v46 = vmax.f32 %v217_v44, 0.0 }
  0xdc   :  { %v713_v47 = vpack.c.bf16 %v233_v46, %v232_v45  ;;  %v252_v61 = vpop.permute.xlu1 %251 }
  0xdd   :  { %v513_v24 = vpop.permute.xlu0 %512 }
  0xde   :  { %714 = vmatprep.subr.bf16.mxu0 %v713_v47  ;;  %724 = vmatprep.subr.bf16.mxu1 %v713_v47 }
  0xdf   :  { %716 = vmatpush3.bf16.msra.mxu0 %v713_v47  ;;  %732 = vmatpush3.bf16.msra.mxu1 %v713_v47 }
  0xe0   :  { %v260_v62 = vpop.permute.xlu1 %259 }
  0xe1   :  { %v517_v47 = vpop.permute.xlu0 %516 }
  0xe2   :  { %662 = vmatmul.mubr.f32.vlgmr.msra.gmra.mrb[0].mxu0 %v235_v48  ;;  %674 = vmatmul.mubr.f32.vlgmr.msra.gmra.mrb[0].mxu1 %v243_v49 }
  0xe3   :  { %664 = vmatprep.mubr.f32.mxu0 %v236_v28  ;;  %676 = vmatprep.mubr.f32.mxu1 %v244_v50 }
  0xe4   :  { %v264_v63 = vpop.permute.xlu1 %263 }
  0xe6   :  { %665 = vmatmul.mubr.f32.gmra.mrb[2].mxu0 %v237_v51  ;;  %677 = vmatmul.mubr.f32.gmra.mrb[2].mxu1 %v245_v52 }
  0xe7   :  { %667 = vmatprep.mubr.f32.mxu0 %v238_v53  ;;  %679 = vmatprep.mubr.f32.mxu1 %v246_v54 }
  0xe9   :  { %v481_v1 = vpop.permute.xlu1 %480 }
  0xea   :  { %668 = vmatmul.mubr.f32.gmra.mrb[4].mxu0 %v239_v55  ;;  %680 = vmatmul.mubr.f32.gmra.mrb[4].mxu1 %v247_v56 }
  0xeb   :  { %670 = vmatprep.mubr.f32.mxu0 %v240_v57  ;;  %682 = vmatprep.mubr.f32.mxu1 %v248_v58 }
  0xee   :  { %671 = vmatmul.mubr.f32.gmra.mrb[6].mxu0 %v241_v59  ;;  %683 = vmatmul.mubr.f32.gmra.mrb[6].mxu1 %v249_v60  ;;  %v268_v3 = vpop.permute.xlu1 %267 }
  0xf2   :  { %v272_v5 = vpop.permute.xlu1 %271 }
  0xf6   :  { %v276_v7 = vpop.permute.xlu1 %275 }
  0xfa   :  { %v280_v9 = vpop.permute.xlu1 %279 }
  0xfe   :  { %v284_v11 = vpop.permute.xlu1 %283 }
 0x102   :  { %v288_v13 = vpop.permute.xlu1 %287 }
 0x106   :  { %v292_v14 = vpop.permute.xlu1 %291 }
 0x10a   :  { %v296_v17 = vpop.permute.xlu1 %295 }
 0x10e   :  { %v300_v36 = vpop.permute.xlu1 %299 }
 0x112   :  { %v304_v60 = vpop.permute.xlu1 %303 }
 0x1b5   :  { %v663_v18 = vpop.f32.mrb[0].mxu0  ;;  %v675_v19 = vpop.f32.mrb[0].mxu1 }
 0x1b6   :  { %v386_v20 = vadd.f32 %v663_v18, %v256_v0  ;;  %v380_v21 = vpop.f32.mrb[1].mxu0  ;;  %v420_v22 = vpop.f32.mrb[1].mxu1 }
 0x1b7   :  { %v381_v23 = vadd.f32 %v380_v21, %v252_v61  ;;  %v421_v56 = vadd.f32 %v420_v22, %v284_v11  ;;  %v426_v61 = vadd.f32 %v675_v19, %v288_v13 }
 0x1b8   :  { %v460_v25 = vmax.f32 %v386_v20, 0.0 }
 0x1b9   :  { %v459_v27 = vmax.f32 %v381_v23, 0.0  ;;  %v666_v29 = vpop.f32.mrb[2].mxu0  ;;  %v678_v30 = vpop.f32.mrb[2].mxu1  ;;  %v468_v18 = vmax.f32 %v426_v61, 0.0 }
 0x1ba   :  { %v540_v31 = vmul.f32 %v481_v1, %v460_v25  ;;  %v396_v32 = vadd.f32 %v666_v29, %v264_v63  ;;  %v390_v26 = vpop.f32.mrb[3].mxu0  ;;  %v430_v33 = vpop.f32.mrb[3].mxu1  ;;  %v436_v20 = vadd.f32 %v678_v30, %v296_v17 }
 0x1bb   :  { %v539_v34 = vmul.f32 %v477_v2, %v459_v27  ;;  %v391_v35 = vadd.f32 %v390_v26, %v260_v62  ;;  %v521_v2 = vpop.permute.xlu0 %520  ;;  %v308_v23 = vpop.permute.xlu1 %307  ;;  %v548_v13 = vmul.f32 %v513_v24, %v468_v18 }
 0x1bc   :  { %v462_v38 = vmax.f32 %v396_v32, 0.0 }
 0x1bd   :  { %v555_v37 = vadd.f32 %v540_v31, %v539_v34  ;;  %v461_v39 = vmax.f32 %v391_v35, 0.0  ;;  %v669_v40 = vpop.f32.mrb[4].mxu0  ;;  %v681_v41 = vpop.f32.mrb[4].mxu1 }
 0x1be   :  { %v406_v42 = vadd.f32 %v669_v40, %v272_v5  ;;  %v400_v43 = vpop.f32.mrb[5].mxu0  ;;  %v440_v44 = vpop.f32.mrb[5].mxu1  ;;  %v542_v48 = vmul.f32 %v489_v6, %v462_v38  ;;  %v446_v19 = vadd.f32 %v681_v41, %v304_v60 }
 0x1bf   :  { %v541_v45 = vmul.f32 %v485_v4, %v461_v39  ;;  %v401_v46 = vadd.f32 %v400_v43, %v268_v3  ;;  %v467_v3 = vmax.f32 %v421_v56, 0.0  ;;  %v431_v4 = vadd.f32 %v430_v33, %v292_v14  ;;  %v525_v25 = vpop.permute.xlu0 %524 }
 0x1c0   :  { %v464_v28 = vmax.f32 %v406_v42, 0.0  ;;  %v441_v22 = vadd.f32 %v440_v44, %v300_v36  ;;  %v472_v33 = vmax.f32 %v446_v19, 0.0 }
 0x1c1   :  { %v556_v49 = vadd.f32 %v555_v37, %v541_v45  ;;  %v463_v50 = vmax.f32 %v401_v46, 0.0  ;;  %v672_v51 = vpop.f32.mrb[6].mxu0  ;;  %v684_v52 = vpop.f32.mrb[6].mxu1  ;;  %v547_v11 = vmul.f32 %v509_v16, %v467_v3 }
 0x1c2   :  { %v416_v53 = vadd.f32 %v672_v51, %v280_v9  ;;  %v410_v54 = vpop.f32.mrb[7].mxu0  ;;  %v450_v55 = vpop.f32.mrb[7].mxu1  ;;  %v544_v62 = vmul.f32 %v497_v10, %v464_v28  ;;  %v470_v10 = vmax.f32 %v436_v20, 0.0  ;;  %v471_v31 = vmax.f32 %v441_v22, 0.0 }
 0x1c3   :  { %v543_v57 = vmul.f32 %v493_v8, %v463_v50  ;;  %v557_v58 = vadd.f32 %v556_v49, %v542_v48  ;;  %v411_v59 = vadd.f32 %v410_v54, %v276_v7  ;;  %v469_v8 = vmax.f32 %v431_v4, 0.0  ;;  %v529_v30 = vpop.permute.xlu0 %528 }
 0x1c4   :  { %v466_v0 = vmax.f32 %v416_v53, 0.0  ;;  %v451_v14 = vadd.f32 %v450_v55, %v308_v23  ;;  %v550_v26 = vmul.f32 %v521_v2, %v470_v10  ;;  %v551_v34 = vmul.f32 %v525_v25, %v471_v31 }
 0x1c5   :  { %v558_v63 = vadd.f32 %v557_v58, %v543_v57  ;;  %v465_v1 = vmax.f32 %v411_v59, 0.0  ;;  %v549_v29 = vmul.f32 %v517_v47, %v469_v8  ;;  %v552_v37 = vmul.f32 %v529_v30, %v472_v33 }
 0x1c6   :  { %v546_v9 = vmul.f32 %v505_v15, %v466_v0  ;;  %v473_v16 = vmax.f32 %v451_v14, 0.0  ;;  %v577_v28 = vstv %s1060_s3 }
 0x1c7   :  { %v545_v5 = vmul.f32 %v501_v12, %v465_v1  ;;  %v559_v6 = vadd.f32 %v558_v63, %v544_v62  ;;  %v312_v12 = vpop.permute.xlu1 %311  ;;  %v537_v41 = vpop.permute.xlu0 %536 }
 0x1c8   :  { %v456_v17 = vadd.f32 %v684_v52, %v312_v12 }
 0x1c9   :  { %v560_v21 = vadd.f32 %v559_v6, %v545_v5 }
 0x1ca   :  { %v474_v38 = vmax.f32 %v456_v17, 0.0 }
 0x1cb   :  { %v561_v7 = vadd.f32 %v560_v21, %v546_v9  ;;  %v533_v36 = vpop.permute.xlu1 %532 }
 0x1cc   :  { %v553_v39 = vmul.f32 %v533_v36, %v473_v16  ;;  %v554_v42 = vmul.f32 %v537_v41, %v474_v38 }
 0x1cd   :  { %v562_v27 = vadd.f32 %v561_v7, %v547_v11 }
 0x1cf   :  { %v563_v32 = vadd.f32 %v562_v27, %v548_v13 }
 0x1d1   :  { %v564_v15 = vadd.f32 %v563_v32, %v549_v29 }
 0x1d3   :  { %v565_v35 = vadd.f32 %v564_v15, %v550_v26 }
 0x1d5   :  { %v566_v24 = vadd.f32 %v565_v35, %v551_v34 }
 0x1d7   :  { %v567_v40 = vadd.f32 %v566_v24, %v552_v37 }
 0x1d9   :  { %v568_v43 = vadd.f32 %v567_v40, %v553_v39 }
 0x1db   :  { %v569_v44 = vadd.f32 %v568_v43, %v554_v42 }
 0x1dd   :  { %v570_v45 = vrot.slane %v569_v44, 4 }
 0x1df   :  { %v571_v46 = vadd.f32 %v570_v45, %v569_v44 }
 0x1e1   :  { %v572_v47 = vrot.slane %v571_v46, 2 }
 0x1e3   :  { %v573_v48 = vadd.f32 %v572_v47, %v571_v46 }
 0x1e5   :  { %v574_v49 = vrot.slane %v573_v48, 1 }
 0x1e7   :  { %v575_v50 = vadd.f32 %v574_v49, %v573_v48 }
 0x1e9   :  { %v578_v51 = vadd.f32 %v577_v28, %v575_v50 }
 0x1eb   :  { %v579_v52 = vand.u32 2147483647, %v578_v51 }
 0x1ed   :  { %v580_v53 = vsub.f32 0.0, %v579_v52 }
 0x1ef   :  { %581 = vst [vmem:[#allocation3] sm:$0x1] %v580_v53 }
 0x1f0   :  { %773 = shalt.err (!%p770_p4)
}
 0x1f1   :  { %s774_s3 = scalar_lea.hbm %s1061_s4, 16 }
 0x1f2   :  { %p775_p5 = scmp.ne.s32.totalorder %s1061_s4, %s774_s3  ;;  %p778_p6 = scmp.lt.u32.totalorder %s774_s3, %s1061_s4 }
 0x1f4   :  { %p780_p7 = pnand %p778_p6, %p775_p5 }
 0x1f6   :  { %783 = shalt.err (!%p780_p7)
}
 0x1f7   :  { %591 = dma.vmem_to_hbm [thread:$0]  %s589_s27, 16, %s1061_s4, [#allocation4]  }
 0x1f8   :  { %784 = dma.done.wait [#allocation4], 16  }
 0x1f9   :  { %785 = vsyncadd [#allocation4], 4294967280 }
 0x1fa   :  { %595 = vsyncpa [#allocation4], 1 }

</bundles_post_ra>
